<compile_context>
chip_gen: v6e
topology: v6e:2x2x1
jax: 0.10.0
libtpu: 0.0.40
codegen_flags: <defaults>
</compile_context>

<pallas_src>
import functools

import jax
import jax.numpy as jnp
from jax.experimental import pallas as pl
from jax.experimental.pallas import tpu as pltpu


# ---------------------------------------------------------------------------
# Kernels
# ---------------------------------------------------------------------------

def _fapn_single_pass_kernel(x_ref, w1t_ref, w2t_ref, o_ref, *, spatial_axis):
    """One batch slab per grid step: GAP -> FC1/ReLU -> FC2/sigmoid -> x*(s+1).

    x_ref/o_ref: (tb, C, HW) when spatial_axis == 2, (tb, HW, C) when == 1.
    w1t_ref: (C, hidden) = W1^T;  w2t_ref: (hidden, C) = W2^T.
    """
    hw = x_ref.shape[spatial_axis]

    # Squeeze: global average pool, accumulated directly in f32.
    m = jnp.sum(x_ref[...], axis=spatial_axis, dtype=jnp.float32) * (1.0 / hw)  # (tb, C)

    # Excitation: two tiny lane-dense row-vector matmuls (latency-only on the
    # MXU, hidden behind the HBM-bound DMA on all of v5e/v6e/v7x).
    z = jnp.maximum(
        jnp.dot(m, w1t_ref[...].astype(jnp.float32),
                preferred_element_type=jnp.float32), 0.0)                        # (tb, hid)
    s = jax.nn.sigmoid(
        jnp.dot(z, w2t_ref[...].astype(jnp.float32),
                preferred_element_type=jnp.float32))                             # (tb, C)

    # Re-scale + residual: x * s + x == x * (s + 1); multiply in the native
    # dtype (keeps bf16 vregs packed; the VPU has slack in this mem-bound op).
    scale = (s + 1.0).astype(o_ref.dtype)                                        # (tb, C)
    if spatial_axis == 2:
        o_ref[...] = x_ref[...] * scale[:, :, None]
    else:
        o_ref[...] = x_ref[...] * scale[:, None, :]


def _gap_kernel(x_ref, sums_ref, *, hw_total, spatial_axis):
    """Two-phase pass 1: masked GAP accumulation over streamed HW tiles.

    Grid = (B, n_hw_tiles), hw innermost ('arbitrary' reduction axis). The f32
    output block (1, C, 1) / (1, 1, C) stays resident across the hw axis and
    acts as the accumulator (P3 init/accumulate pattern).
    """
    h = pl.program_id(1)

    @pl.when(h == 0)
    def _init():
        sums_ref[...] = jnp.zeros_like(sums_ref)

    x = x_ref[...]
    thw = x.shape[spatial_axis]
    if hw_total % thw != 0:
        # Ragged trailing tile: zero out-of-range spatial positions.
        pos = jax.lax.broadcasted_iota(jnp.int32, x.shape, spatial_axis) + h * thw
        x = jnp.where(pos < hw_total, x, 0)
    sums_ref[...] += jnp.sum(x, axis=spatial_axis, keepdims=True, dtype=jnp.float32)


def _rescale_kernel(x_ref, scale_ref, o_ref):
    """Two-phase pass 2: out = x * (s + 1); scale broadcasts over the spatial axis."""
    o_ref[...] = x_ref[...] * scale_ref[...]


# ---------------------------------------------------------------------------
# Tiling / routing helpers
# ---------------------------------------------------------------------------

def _vmem_limits():
    """Generation-aware VMEM sizing -> (vmem_limit_bytes, pipeline_budget_bytes)."""
    try:
        cap = int(pltpu.get_tpu_info().vmem_capacity_bytes)
    except Exception:
        cap = 64 * 1024 * 1024                      # conservative (v7x-sized) fallback
    vmem_limit = min((cap * 3) // 4, 100 * 1024 * 1024)   # ~96 MiB v5e/v6e, ~48 MiB v7x
    budget = (vmem_limit * 3) // 5                  # headroom for weights + compiler scratch
    return vmem_limit, budget


def _choose_tb(B, slab_bytes, budget):
    """Largest batch tile whose ~2x(in+out) pipeline buffers fit `budget`,
    preferring >= 4 grid steps (>= 2 per TensorCore on v7x), then >= 2."""
    divisors = [d for d in range(1, B + 1) if B % d == 0]
    fitting = [d for d in divisors if 4 * d * slab_bytes <= budget]
    if not fitting:
        return None                                 # even tb=1 too big -> two-phase path
    for min_steps in (4, 2, 1):
        cands = [d for d in fitting if B // d >= min_steps]
        if cands:
            return max(cands)
    return max(fitting)


# Slabs at least this large with too few grid steps are routed to the two-phase
# streaming path so the BlockSpec pipeline has >= 2 steps per core to overlap.
_MIN_SLAB_BYTES_FOR_STREAMING = 8 * 1024 * 1024


# ---------------------------------------------------------------------------
# pallas_call wrappers
# ---------------------------------------------------------------------------

def _single_pass_call(x_flat, w1t, w2t, *, tb, spatial_axis, vmem_limit, donate_input):
    B = x_flat.shape[0]
    C, hidden = w1t.shape
    HW = x_flat.shape[spatial_axis]
    itemsize = jnp.dtype(x_flat.dtype).itemsize
    w_itemsize = jnp.dtype(w1t.dtype).itemsize
    block = (tb,) + x_flat.shape[1:]

    kernel = functools.partial(_fapn_single_pass_kernel, spatial_axis=spatial_axis)
    return pl.pallas_call(
        kernel,
        out_shape=jax.ShapeDtypeStruct(x_flat.shape, x_flat.dtype),
        grid_spec=pltpu.PrefetchScalarGridSpec(
            num_scalar_prefetch=0,
            grid=(B // tb,),
            in_specs=[
                pl.BlockSpec(block, lambda b: (b, 0, 0)),        # x slab
                # TODO(synk): single-buffer the constant-index weight blocks
                # (pipeline_mode=pl.Buffered(1)) once that knob is stable.
                pl.BlockSpec(w1t.shape, lambda b: (0, 0)),        # W1^T (full)
                pl.BlockSpec(w2t.shape, lambda b: (0, 0)),        # W2^T (full)
            ],
            out_specs=pl.BlockSpec(block, lambda b: (b, 0, 0)),
        ),
        compiler_params=pltpu.CompilerParams(
            dimension_semantics=("parallel",),
            vmem_limit_bytes=vmem_limit,
        ),
        cost_estimate=pl.CostEstimate(
            flops=3 * B * C * HW + 4 * B * C * hidden,
            transcendentals=B * C,
            bytes_accessed=2 * B * C * HW * itemsize + 2 * C * hidden * w_itemsize,
        ),
        input_output_aliases=({0: 0} if donate_input else {}),
    )(x_flat, w1t, w2t)


def _two_phase_call(x_flat, w1t, w2t, *, spatial_axis, hw_tile, budget, vmem_limit,
                    donate_input):
    B = x_flat.shape[0]
    C, hidden = w1t.shape
    HW = x_flat.shape[spatial_axis]
    itemsize = jnp.dtype(x_flat.dtype).itemsize

    # Spatial tile: the lane axis (channels-first) needs a multiple of 128, the
    # sublane axis (channels-last) a multiple of 8; a full-extent tile is legal.
    lane_mult = 128 if spatial_axis == 2 else 8
    if hw_tile is None:
        max_rows = budget // (4 * C * itemsize)
        hw_tile = min(HW, max(lane_mult, (max_rows // lane_mult) * lane_mult))
    else:
        hw_tile = max(1, min(int(hw_tile), HW))
    if hw_tile < HW and hw_tile % lane_mult != 0:
        hw_tile = min(HW, ((hw_tile + lane_mult - 1) // lane_mult) * lane_mult)
    n_hw = -(-HW // hw_tile)

    if spatial_axis == 2:                            # x: (B, C, HW)
        x_block = (1, C, hw_tile)
        x_index = lambda b, h: (b, 0, h)
        vec_shape, vec_block = (B, C, 1), (1, C, 1)
    else:                                            # x: (B, HW, C)
        x_block = (1, hw_tile, C)
        x_index = lambda b, h: (b, h, 0)
        vec_shape, vec_block = (B, 1, C), (1, 1, C)

    # Pass 1: stream HW tiles, accumulate the (masked) GAP sums in f32.
    sums = pl.pallas_call(
        functools.partial(_gap_kernel, hw_total=HW, spatial_axis=spatial_axis),
        out_shape=jax.ShapeDtypeStruct(vec_shape, jnp.float32),
        grid_spec=pltpu.PrefetchScalarGridSpec(
            num_scalar_prefetch=0,
            grid=(B, n_hw),
            in_specs=[pl.BlockSpec(x_block, x_index)],
            out_specs=pl.BlockSpec(vec_block, lambda b, h: (b, 0, 0)),
        ),
        compiler_params=pltpu.CompilerParams(
            dimension_semantics=("parallel", "arbitrary"),
            vmem_limit_bytes=vmem_limit,
        ),
        cost_estimate=pl.CostEstimate(
            flops=B * C * HW,
            transcendentals=0,
            bytes_accessed=B * C * HW * itemsize + B * C * 4,
        ),
    )(x_flat)

    # Tiny excitation MLP (O(B*C) work) runs once, as plain XLA, between passes.
    m = sums.reshape(B, C) * (1.0 / HW)
    z = jnp.maximum(m @ w1t.astype(jnp.float32), 0.0)
    s = jax.nn.sigmoid(z @ w2t.astype(jnp.float32))
    scale = (s + 1.0).astype(x_flat.dtype).reshape(vec_shape)

    # Pass 2: re-stream HW tiles and apply out = x * (s + 1).
    return pl.pallas_call(
        _rescale_kernel,
        out_shape=jax.ShapeDtypeStruct(x_flat.shape, x_flat.dtype),
        grid_spec=pltpu.PrefetchScalarGridSpec(
            num_scalar_prefetch=0,
            grid=(B, n_hw),
            in_specs=[
                pl.BlockSpec(x_block, x_index),
                pl.BlockSpec(vec_block, lambda b, h: (b, 0, 0)),
            ],
            out_specs=pl.BlockSpec(x_block, x_index),
        ),
        compiler_params=pltpu.CompilerParams(
            dimension_semantics=("parallel", "parallel"),
            vmem_limit_bytes=vmem_limit,
        ),
        cost_estimate=pl.CostEstimate(
            flops=B * C * HW,
            transcendentals=0,
            bytes_accessed=2 * B * C * HW * itemsize + B * C * itemsize,
        ),
        input_output_aliases=({0: 0} if donate_input else {}),
    )(x_flat, scale)


# ---------------------------------------------------------------------------
# Public entry point
# ---------------------------------------------------------------------------

def fapn(x_nchw, w1, w2, *, force_two_phase=False, hw_tile=None, donate_input=False):
    """FaPN forward. x_nchw: (B, C, H, W); w1: (C//r, C); w2: (C, C//r).

    Set donate_input=True only if the caller does not need x afterwards (the
    output then aliases x's HBM buffer).
    """
    B, C, H, W = x_nchw.shape
    HW = H * W
    itemsize = jnp.dtype(x_nchw.dtype).itemsize

    vmem_limit, budget = _vmem_limits()

    # Lane-dense layout selection (layout plumbing only; transposes stay in XLA).
    channels_last = (C % 128 == 0) and (HW % 128 != 0)
    if channels_last:
        x_flat = jnp.transpose(x_nchw, (0, 2, 3, 1)).reshape(B, HW, C)
        spatial_axis = 1
    else:
        x_flat = x_nchw.reshape(B, C, HW)
        spatial_axis = 2

    # Pre-transpose the tiny weights once so both FCs are row-vector matmuls
    # with lane-dense outputs.
    w1t = w1.T                                       # (C, hidden)
    w2t = w2.T                                       # (hidden, C)

    slab_bytes = C * HW * itemsize
    tb = None if force_two_phase else _choose_tb(B, slab_bytes, budget)
    if (tb is not None and B // tb < 2
            and slab_bytes >= _MIN_SLAB_BYTES_FOR_STREAMING):
        tb = None   # too few grid steps for DMA/compute overlap -> stream HW tiles

    if tb is not None:
        out_flat = _single_pass_call(
            x_flat, w1t, w2t, tb=tb, spatial_axis=spatial_axis,
            vmem_limit=vmem_limit, donate_input=donate_input)
    else:
        out_flat = _two_phase_call(
            x_flat, w1t, w2t, spatial_axis=spatial_axis, hw_tile=hw_tile,
            budget=budget, vmem_limit=vmem_limit, donate_input=donate_input)

    if channels_last:
        return jnp.transpose(out_flat.reshape(B, H, W, C), (0, 3, 1, 2))
    return out_flat.reshape(B, C, H, W)


def fapn_reference(x, w1, w2):
    """Pure-JAX reference matching the PyTorch semantics."""
    B, C, H, W = x.shape
    y = jnp.mean(x, axis=(2, 3))                     # (B, C)
    y = jnp.maximum(y @ w1.T, 0.0)                   # (B, C//r)
    y = jax.nn.sigmoid(y @ w2.T)                     # (B, C)
    y = y.reshape(B, C, 1, 1)
    return x * y + x


# ---------------------------------------------------------------------------
# Self-test
# ---------------------------------------------------------------------------

if __name__ == "__main__":
    reduction = 16

    def make_inputs(B, C, H, W, key):
        kx, k1, k2 = jax.random.split(key, 3)
        hidden = max(1, C // reduction)
        x = jax.random.normal(kx, (B, C, H, W), dtype=jnp.float32)
        w1 = jax.random.normal(k1, (hidden, C), dtype=jnp.float32) * 0.1
        w2 = jax.random.normal(k2, (C, hidden), dtype=jnp.float32) * 0.1
        return x, w1, w2

    def check(out, ref, tol, name):
        assert out.shape == ref.shape, f"{name}: shape mismatch"
        assert jnp.allclose(out.astype(jnp.float32), ref, atol=tol, rtol=tol), \
            f"{name}: mismatch vs reference"

    key = jax.random.PRNGKey(0)
    ka, kb = jax.random.split(key)

    # Case 1: channels-first single-pass (HW = 256 is lane-dense), f32 + bf16.
    x, w1, w2 = make_inputs(2, 32, 16, 16, ka)
    ref = fapn_reference(x, w1, w2)
    out = jax.block_until_ready(fapn(x, w1, w2))
    check(out, ref, 1e-5, "single-pass f32")

    x_bf = x.astype(jnp.bfloat16)
    out_bf = jax.block_until_ready(fapn(x_bf, w1, w2))
    assert out_bf.dtype == jnp.bfloat16
    check(out_bf, fapn_reference(x_bf.astype(jnp.float32), w1, w2), 1e-1,
          "single-pass bf16")

    # Case 2: forced two-phase streaming path (channels-first, HW tiled by 128).
    out2 = jax.block_until_ready(fapn(x, w1, w2, force_two_phase=True, hw_tile=128))
    check(out2, ref, 1e-4, "two-phase channels-first")

    # Case 3: channels-last layout (C % 128 == 0, ragged HW = 49), single-pass.
    x3, w13, w23 = make_inputs(2, 128, 7, 7, kb)
    ref3 = fapn_reference(x3, w13, w23)
    out3 = jax.block_until_ready(fapn(x3, w13, w23))
    check(out3, ref3, 5e-3, "single-pass channels-last")

    # Case 4: channels-last two-phase with a partial trailing HW tile (masked GAP).
    out4 = jax.block_until_ready(fapn(x3, w13, w23, force_two_phase=True, hw_tile=8))
    check(out4, ref3, 1e-4, "two-phase channels-last (ragged tile)")

    print("KERNEL_OK")
</pallas_src>

<mosaic_0001>
module attributes {stable_mosaic.version = 11 : i64} {
  func.func @_fapn_single_pass_kernel(%arg0: i32, %arg1: memref<1x32x256xf32, #tpu.memory_space<vmem>>, %arg2: memref<32x2xf32, #tpu.memory_space<vmem>>, %arg3: memref<2x32xf32, #tpu.memory_space<vmem>>, %arg4: memref<1x32x256xf32, #tpu.memory_space<vmem>>) attributes {dimension_semantics = [#tpu.dimension_semantics<parallel>], iteration_bounds = array<i64: 2>, scalar_prefetch = 0 : i64, scratch_operands = 0 : i64, tpu.core_type = #tpu.core_type<tc>, window_params = [{transform_indices = @transform_0, window_bounds = array<i64: 1, 32, 256>}, {pipeline_mode = #tpu.pipeline_mode<synchronous>, transform_indices = @transform_1, window_bounds = array<i64: 32, 2>}, {pipeline_mode = #tpu.pipeline_mode<synchronous>, transform_indices = @transform_2, window_bounds = array<i64: 2, 32>}, {transform_indices = @transform_3, window_bounds = array<i64: 1, 32, 256>}]} {
    %c0 = arith.constant 0 : index
    %c0_0 = arith.constant 0 : index
    %c0_1 = arith.constant 0 : index
    %0 = vector.load %arg1[%c0, %c0_0, %c0_1] : memref<1x32x256xf32, #tpu.memory_space<vmem>>, vector<1x32x256xf32>
    %cst = arith.constant dense<0.000000e+00> : vector<1x32xf32>
    %1 = vector.multi_reduction <add>, %0, %cst [2] : vector<1x32x256xf32> to vector<1x32xf32>
    %cst_2 = arith.constant 3.906250e-03 : f32
    %2 = vector.broadcast %cst_2 : f32 to vector<1x32xf32>
    %3 = arith.mulf %1, %2 : vector<1x32xf32>
    %c0_3 = arith.constant 0 : index
    %c0_4 = arith.constant 0 : index
    %4 = vector.load %arg2[%c0_3, %c0_4] : memref<32x2xf32, #tpu.memory_space<vmem>>, vector<32x2xf32>
    %cst_5 = arith.constant dense<0.000000e+00> : vector<1x2xf32>
    %5 = tpu.matmul %3, %4, %cst_5 {dimension_numbers = #tpu.dot_dimension_numbers<[1], [0], [0], [1], [0, 0, 1, 1], [], []>} : vector<1x32xf32>, vector<32x2xf32>, vector<1x2xf32> -> vector<1x2xf32>
    %cst_6 = arith.constant 0.000000e+00 : f32
    %6 = vector.broadcast %cst_6 : f32 to vector<1x2xf32>
    %7 = arith.maximumf %5, %6 : vector<1x2xf32>
    %c0_7 = arith.constant 0 : index
    %c0_8 = arith.constant 0 : index
    %8 = vector.load %arg3[%c0_7, %c0_8] : memref<2x32xf32, #tpu.memory_space<vmem>>, vector<2x32xf32>
    %cst_9 = arith.constant dense<0.000000e+00> : vector<1x32xf32>
    %9 = tpu.matmul %7, %8, %cst_9 {dimension_numbers = #tpu.dot_dimension_numbers<[1], [0], [0], [1], [0, 0, 1, 1], [], []>} : vector<1x2xf32>, vector<2x32xf32>, vector<1x32xf32> -> vector<1x32xf32>
    %10 = arith.negf %9 : vector<1x32xf32>
    %11 = math.exp %10 : vector<1x32xf32>
    %cst_10 = arith.constant 1.000000e+00 : f32
    %12 = vector.broadcast %cst_10 : f32 to vector<1x32xf32>
    %13 = arith.addf %12, %11 : vector<1x32xf32>
    %14 = arith.divf %12, %13 : vector<1x32xf32>
    %cst_11 = arith.constant 1.000000e+00 : f32
    %15 = vector.broadcast %cst_11 : f32 to vector<1x32xf32>
    %16 = arith.addf %14, %15 : vector<1x32xf32>
    %c0_12 = arith.constant 0 : index
    %c0_13 = arith.constant 0 : index
    %c0_14 = arith.constant 0 : index
    %17 = vector.load %arg1[%c0_12, %c0_13, %c0_14] : memref<1x32x256xf32, #tpu.memory_space<vmem>>, vector<1x32x256xf32>
    %18 = vector.shape_cast %16 : vector<1x32xf32> to vector<1x32x1xf32>
    %19 = vector.broadcast %18 : vector<1x32x1xf32> to vector<1x32x256xf32>
    %20 = arith.mulf %17, %19 : vector<1x32x256xf32>
    %c0_15 = arith.constant 0 : index
    %c0_16 = arith.constant 0 : index
    %c0_17 = arith.constant 0 : index
    %21 = vector.load %arg4[%c0_15, %c0_16, %c0_17] : memref<1x32x256xf32, #tpu.memory_space<vmem>>, vector<1x32x256xf32>
    tpu.vector_store %arg4[%c0_15, %c0_16, %c0_17], %20 {strides = array<i32>} : memref<1x32x256xf32, #tpu.memory_space<vmem>>, vector<1x32x256xf32>,
    return
  }
  func.func @transform_0(%arg0: i32) -> (i32, i32, i32) {
    %c0_i32 = arith.constant 0 : i32
    %c0_i32_0 = arith.constant 0 : i32
    %c0_i32_1 = arith.constant 0 : i32
    return %arg0, %c0_i32, %c0_i32_0 : i32, i32, i32
  }
  func.func @transform_1(%arg0: i32) -> (i32, i32) {
    %c0_i32 = arith.constant 0 : i32
    %c0_i32_0 = arith.constant 0 : i32
    %c0_i32_1 = arith.constant 0 : i32
    return %c0_i32, %c0_i32_0 : i32, i32
  }
  func.func @transform_2(%arg0: i32) -> (i32, i32) {
    %c0_i32 = arith.constant 0 : i32
    %c0_i32_0 = arith.constant 0 : i32
    %c0_i32_1 = arith.constant 0 : i32
    return %c0_i32, %c0_i32_0 : i32, i32
  }
  func.func @transform_3(%arg0: i32) -> (i32, i32, i32) {
    %c0_i32 = arith.constant 0 : i32
    %c0_i32_0 = arith.constant 0 : i32
    %c0_i32_1 = arith.constant 0 : i32
    return %arg0, %c0_i32, %c0_i32_0 : i32, i32, i32
  }
}

</mosaic_0001>

<bundles_post_ra>
// kernel: tpu_custom_call.1
= control target key start
LH: loop header
LB: loop body
LE: loop exit
PB: predicated region body
PF: predicated region fallthrough
CT: control target
= control target key end

     0   :  { %8 = vsyncpa [#allocation3], 0  ;;  %s956_s0 = inlined_call_operand.hbm [shape: f32[2,32,256], index: 0, kind: input, shape index: {}]   ;;  %s957_s1 = inlined_call_operand.vmem [shape: f32[32,2], index: 1, kind: input, shape index: {}]   ;;  %s958_s2 = inlined_call_operand.vmem [shape: f32[2,32], index: 2, kind: input, shape index: {}]   ;;  %s959_s3 = inlined_call_operand.hbm [shape: f32[2,32,256], index: 3, kind: output, shape index: {}]  }
   0x1   :  { %10 = vsyncpa [#allocation3 + $0x1], 0 }
   0x2   :  { %11 = vsyncpa [#allocation4], 0 }
   0x3   :  { %13 = vsyncpa [#allocation4 + $0x1], 0  ;;  %s751_s12 = smov 0   ;;  %s753_s13 = smov 0  }
   0x4   :  { %s755_s14 = smov 0   ;;  %s757_s15 = smov 0  }
   0x5 LB: > { %s772_s16 = sadd.s32 4294967295, %s721_s15   ;;  %s530_s17 = sadd.s32 4294967294, %s721_s15   ;;  %s721_s15 = sphi %s757_s15, %s974_s15   ;;  %s717_s14 = sphi %s755_s14, %s973_s14   ;;  %s713_s13 = sphi %s753_s13, %s972_s13   ;;  %s709_s12 = sphi %s751_s12, %s971_s12  }
   0x6   : > { %s776_s18 = sadd.s32 1, %s721_s15   ;;  %s26_s19 = sadd.s32 1, %s717_s14 }
   0x7   : > { %s23_s20 = ssub.s32 %s721_s15, %s776_s18  ;;  %p33_p0 = scmp.ne.s32.totalorder %s717_s14, %s713_s13 }
   0x8   : > { %p24_p1 = scmp.eq.s32.totalorder %s23_s20, 0  ;;  %p34_p2 = scmp.eq.s32.totalorder %s721_s15, 0 }
   0x9   : > { %p39_p3 = scmp.ne.s32.totalorder %s713_s13, %s709_s12  ;;  %p40_p4 = scmp.eq.s32.totalorder %s772_s16, 0 }
   0xa   : > { %s788_s21 = scalar_select %p24_p1, %s717_s14, %s26_s19  }
   0xb   : > { %p790_p5 = por %p34_p2, %p33_p0  ;;  %p794_p6 = por %p40_p4, %p39_p3 }
   0xc   : > { %p105_p7 = scmp.eq.s32.totalorder %s772_s16, 1  ;;  %p111_p8 = scmp.eq.s32.totalorder %s530_s17, 1 }
   0xd   : > { %s963_s23 = scalar_select %p794_p6, 1, 0 }
   0xe   : > { %p585_p10 = scmp.lt.s32.totalorder %s721_s15, 2  ;;  %p801_p11 = por %p105_p7, %p33_p0 }
   0xf   : > { %p805_p12 = por %p111_p8, %p39_p3  ;;  %s137_s26 = sand.u32 1, %s717_s14  }
  0x10   : > { %s964_s24 = scalar_select %p801_p11, 1, 0 }
  0x11   : > { %s965_s25 = scalar_select %p805_p12, 1, 0 }
  0x12   : > { %s548_s27 = sshll.u32 %s721_s15, 10  ;;  %s533_s28 = sshll.u32 %s137_s26, 6 }
  0x13   : > { %s814_s4 = scalar_lea.hbm %s956_s0, %s548_s27  ;;  %s141_s5 = scalar_lea.vmem [#allocation2], %s533_s28 }
  0x14   : > { %s148_s6 = sshll.u32 %s141_s5, 4  ;;  %p818_p13 = pnand %p585_p10, %p790_p5  ;;  %s822_s6 = int_to_ptr.vmem [resolvable:$true] %s148_s6 }
  0x15   : > { %s824_s8 = scalar_lea.sflag [#allocation3], %s137_s26  ;;  %s629_s9 = scalar_lea.hbm %s814_s4, 1024 }
  0x16   : > { %p630_p0 = scmp.ne.s32.totalorder %s814_s4, %s629_s9  ;;  %p631_p1 = pneg %p818_p13 }
  0x17   : > { %s634_s17 = scalar_lea.hbm %s956_s0, 2048  ;;  %p635_p4 = scmp.lt.s32.totalorder %s814_s4, %s956_s0 }
  0x18   : > { %p632_p2 = pnand %p631_p1, %p630_p0  ;;  %p636_p5 = scmp.lt.s32.totalorder %s634_s17, %s629_s9 }
  0x1a   : > { %p633_p3 = pneg %p632_p2  ;;  %p637_p7 = por %p636_p5, %p635_p4 }
  0x1c   : > { %p638_p8 = pnand %p637_p7, %p633_p3 }
  0x1e   : > { %641 = shalt.err (!%p638_p8)
}
  0x1f   : > { %s642_s22 = scalar_lea.vmem %s822_s6, 1024  ;;  %s723_s26 = smov [#allocation2]  }
  0x20   : > { %p643_p10 = scmp.ne.s32.totalorder %s822_s6, %s642_s22  ;;  %s647_s27 = sshll.u32 %s723_s26, 4  ;;  %s648_s27 = int_to_ptr.vmem [resolvable:$false] %s647_s27 }
  0x21   : > { %s649_s28 = scalar_lea.vmem %s648_s27, 2048  ;;  %p650_p2 = scmp.lt.s32.totalorder %s822_s6, %s648_s27 }
  0x22   : > { %p645_p9 = pnand %p643_p10, %p631_p1  ;;  %p651_p12 = scmp.lt.s32.totalorder %s649_s28, %s642_s22 }
  0x24   : > { %p646_p0 = pneg %p645_p9  ;;  %p652_p11 = por %p651_p12, %p650_p2 }
  0x26   : > { %p653_p6 = pnand %p652_p11, %p646_p0 }
  0x28   : > { %656 = shalt.err (!%p653_p6)
}
  0x29   : > { %s724_s29 = smov 256   ;;  %s725_s30 = smov 16  }
  0x2a   : > { %580 = dma.hbm_to_vmem [thread:$0]  (!%p818_p13), %s814_s4, 1024, %s822_s6, %s824_s8, %s724_s29, %s724_s29, %s725_s30  }
  0x2b   : > { %p536_p9 = scmp.ge.s32.totalorder %s721_s15, 1  ;;  %p156_p1 = scmp.lt.s32.totalorder %s721_s15, 3 }
  0x2d   : > { %p157_p3 = pnand %p536_p9, %p156_p1 }
  0x2e   : > { %s848_s5 = sand.u32 (!%p157_p3), 1, %s713_s13   ;;  %p967_p6 = scmp.ne.s32.totalorder (!%p157_p3), %s963_s23, 0 }
  0x2f   : > { %160 = sbr.rel (%p157_p3) target bundleno = 768 (0x300), region = 32  ;;  %s537_s9 = sshll.u32 (!%p157_p3), %s848_s5, 6 }
  0x30   : > { %s163_s10 = scalar_lea.sflag (!%p157_p3), [#allocation3], %s848_s5  ;;  %s166_s11 = scalar_lea.vmem (!%p157_p3), [#allocation2], %s537_s9 }
  0x34   : > { %700 = dma.done.wait (%p967_p6), %s163_s10, 1024  }
  0x35   : > { %702 = vsyncadd (%p967_p6), %s163_s10, 4294966272  ;;  %v858_v0 = vld [vmem:[%s166_s11] sm:$0xff]  ;;  %v860_v1 = vld [vmem:[%s166_s11 + $0x8] sm:$0xff]  ;;  %v726_v12 = vmov 0.0   ;;  %vm727_vm0 = vmmov 0   ;;  %v221_v17 = vlaneseq  ;;  %vm232_vm1 = vcmask 130112  }
  0x36   : > { %v862_v2 = vld [vmem:[%s166_s11 + $0x20] sm:$0xff]  ;;  %v197_v3 = vadd.f32 %v860_v1, %v858_v0  ;;  %v866_v4 = vld [vmem:[%s166_s11 + $0x28] sm:$0xff]  ;;  %v868_v5 = vld [vmem:[%s166_s11 + $0x10] sm:$0xff]  ;;  %557 = vmatprep.subr.mxu0 %v726_v12  ;;  %568 = vmatprep.subr.mxu1 %v726_v12  ;;  %vm239_vm2 = vcmask 195712   ;;  %vm246_vm3 = vcmask 261312   ;;  %vm248_vm4 = vcmask 261120  }
  0x37   : > { %v870_v6 = vld [vmem:[%s166_s11 + $0x18] sm:$0xff]  ;;  %v203_v7 = vadd.f32 %v866_v4, %v862_v2  ;;  %v874_v8 = vld [vmem:[%s166_s11 + $0x30] sm:$0xff]  ;;  %v214_v15 = vld [vmem:[%s957_s1 + $0x8] sm:$0xff]  ;;  %565 = vmatprep.mubr.msk.f32.mxu0 %vm727_vm0, %v726_v12  ;;  %570 = vmatprep.mubr.msk.f32.mxu1 %vm727_vm0, %v726_v12  ;;  %v222_v18 = vand.u32 127, %v221_v17  ;;  %v224_v19 = vshrl.u32 %v221_v17, 7  ;;  %vm327_vm5 = vcmask 1041408  }
  0x38   : > { %v876_v9 = vld [vmem:[%s166_s11 + $0x38] sm:$0xff]  ;;  %198 = vadd.xlane.f32.xlu0 %v197_v3  ;;  %v200_v10 = vadd.f32 %v870_v6, %v868_v5  ;;  %v215_v14 = vld [vmem:[%s957_s1 + $0x10] sm:$0xff]  ;;  %v213_v16 = vld [vmem:[%s957_s1] sm:$0xff]  ;;  %vm323_vm6 = vcmask 15360   ;;  %s188_s27 = scalar_lea.vmem [#allocation5], %s537_s9  ;;  %s549_s29 = sshll.u32 %s772_s16, 10 }
  0x39   : > { %204 = vadd.xlane.f32.xlu1 %v203_v7  ;;  %v206_v11 = vadd.f32 %v876_v9, %v874_v8  ;;  %v216_v13 = vld [vmem:[%s957_s1 + $0x18] sm:$0xff]  ;;  %v227_v20 = vadd.s32 4294967288, %v222_v18  ;;  %v234_v22 = vadd.s32 4294967280, %v222_v18  ;;  %v241_v23 = vadd.s32 4294967272, %v222_v18  ;;  %v322_v42 = vld [vmem:[%s958_s2] sm:$0x3]  ;;  %s911_s10 = scalar_lea.hbm %s959_s3, %s549_s29 }
  0x3a   : > { %558 = vmatpush3.msra.mxu0 %v216_v13  ;;  %v225_v25 = vsub.s32 %v222_v18, %v224_v19  ;;  %569 = vmatpush3.msk.msra.mxu1 %vm327_vm5, %v322_v42  ;;  %v410_v51 = vsub.s32 0, %v224_v19  ;;  %s457_s28 = sshll.u32 %s188_s27, 4  ;;  %s444_s16 = scalar_lea.sflag [#allocation4], %s848_s5  ;;  %s906_s28 = int_to_ptr.vmem [resolvable:$true] %s457_s28 }
  0x3b   : > { %559 = vmatprep.subr.mxu0 %v726_v12  ;;  %v230_v27 = vsub.s32 %v227_v20, %v224_v19  ;;  %v237_v28 = vsub.s32 %v234_v22, %v224_v19  ;;  %v244_v31 = vsub.s32 %v241_v23, %v224_v19  ;;  %s657_s11 = scalar_lea.vmem %s906_s28, 1024  ;;  %p968_p12 = scmp.ne.s32.totalorder %s964_s24, 0 }
  0x3c   : > { %201 = vadd.xlane.f32.xlu0 %v200_v10  ;;  %560 = vmatpush3.msra.mxu0 %v215_v14  ;;  %p658_p11 = scmp.ne.s32.totalorder %s906_s28, %s657_s11  ;;  %s728_s23 = smov [#allocation5]  }
  0x3d   : > { %207 = vadd.xlane.f32.xlu1 %v206_v11  ;;  %561 = vmatprep.subr.mxu0 %v726_v12  ;;  %s661_s4 = sshll.u32 %s728_s23, 4  ;;  %s662_s4 = int_to_ptr.vmem [resolvable:$false] %s661_s4 }
  0x3e   : > { %562 = vmatpush3.msra.mxu0 %v214_v15  ;;  %p659_p13 = pnand %p658_p11, %p968_p12  ;;  %s663_s6 = scalar_lea.vmem %s662_s4, 2048 }
  0x3f   : > { %563 = vmatprep.subr.mxu0 %v726_v12  ;;  %p664_p5 = scmp.lt.s32.totalorder %s906_s28, %s662_s4  ;;  %p665_p7 = scmp.lt.s32.totalorder %s663_s6, %s657_s11 }
  0x40   : > { %564 = vmatpush3.msra.mxu0 %v213_v16  ;;  %p660_p4 = pneg %p659_p13 }
  0x41   : > { %p666_p8 = por %p665_p7, %p664_p5 }
  0x43   : > { %p667_p10 = pnand %p666_p8, %p660_p4 }
  0xc1   : > { %v199_v21 = vpop.xlane.xlu0 %198 }
  0xc2   : > { %v205_v24 = vpop.xlane.xlu1 %204  ;;  %v209_v26 = vmul.f32 0.00390625, %v199_v21 }
  0xc3   : > { %v211_v29 = vmul.f32 0.00390625, %v205_v24 }
  0xc4   : > { %v226_v35 = vrot.slane %v209_v26, %v225_v25 }
  0xc5   : > { %v202_v30 = vpop.xlane.xlu0 %201  ;;  %v238_v37 = vrot.slane %v211_v29, %v237_v28 }
  0xc6   : > { %v210_v32 = vmul.f32 0.00390625, %v202_v30  ;;  %v208_v33 = vpop.xlane.xlu1 %207 }
  0xc7   : > { %v212_v34 = vmul.f32 0.00390625, %v208_v33 }
  0xc8   : > { %v231_v36 = vrot.slane %v210_v32, %v230_v27 }
  0xc9   : > { %v245_v38 = vrot.slane %v212_v34, %v244_v31 }
  0xca   : > { %v233_v39 = vsel %vm232_vm1, %v231_v36, %v226_v35 }
  0xcb   : > { %v240_v40 = vsel %vm239_vm2, %v238_v37, %v233_v39 }
  0xcc   : > { %v247_v41 = vsel %vm246_vm3, %v245_v38, %v240_v40 }
  0xcd   : > { %566 = vmatmul.mubr.msk.f32.vlgmr.msra.gmra.mxu0 %vm248_vm4, %v247_v41 }
 0x18d   : > { %v317_v43 = vpop.f32.mrf.mxu0 }
 0x18e   : > { %v321_v44 = vmax.f32 %v317_v43, 0.0 }
 0x18f   : > { %v567_v45 = vpop.f32.mrf.mxu0 }
 0x190   : > { %571 = vmatmul.mubr.msk.f32.vlgmr.msra.gmra.mxu1 %vm323_vm6, %v321_v44 }
 0x250   : > { %v397_v46 = vpop.f32.mrf.mxu1 }
 0x251   : > { %v542_v47 = vmul.f32 -1.442695, %v397_v46 }
 0x252   : > { %v572_v48 = vpop.f32.mrf.mxu1 }
 0x253   : > { %625 = vpow2.f32 %v542_v47 }
 0x260   : > { %v626_v49 = vpop.eup %625 }
 0x261   : > { %v404_v50 = vadd.f32 1.0, %v626_v49 }
 0x263   : > { %627 = vrcp.f32 %v404_v50 }
 0x270   : > { %v628_v52 = vpop.eup %627 }
 0x271   : > { %v407_v53 = vadd.f32 1.0, %v628_v52 }
 0x273   : > { %v411_v54 = vrot.slane %v407_v53, %v410_v51 }
 0x275   : > { %417 = vbcast.lane.b32.xlu1 %v411_v54, 264  ;;  %413 = vbcast.lane.b32.xlu0 %v411_v54, 256 }
 0x279   : > { %421 = vbcast.lane.b32.xlu1 %v411_v54, 272 }
 0x27d   : > { %425 = vbcast.lane.b32.xlu1 %v411_v54, 280 }
 0x2e7   : > { %v418_v55 = vpop.permute.xlu1 %417  ;;  %v414_v56 = vpop.permute.xlu0 %413 }
 0x2e8   : > { %v429_v57 = vmul.f32 %v418_v55, %v868_v5  ;;  %v430_v58 = vmul.f32 %v418_v55, %v870_v6  ;;  %v427_v59 = vmul.f32 %v414_v56, %v858_v0  ;;  %v428_v60 = vmul.f32 %v414_v56, %v860_v1 }
 0x2ea   : > { %437 = vst [vmem:[%s188_s27 + $0x10] sm:$0xff] %v429_v57  ;;  %438 = vst [vmem:[%s188_s27 + $0x18] sm:$0xff] %v430_v58 }
 0x2eb   : > { %435 = vst [vmem:[%s188_s27] sm:$0xff] %v427_v59  ;;  %436 = vst [vmem:[%s188_s27 + $0x8] sm:$0xff] %v428_v60  ;;  %v422_v61 = vpop.permute.xlu1 %421 }
 0x2ec   : > { %v431_v62 = vmul.f32 %v422_v61, %v862_v2  ;;  %v432_v63 = vmul.f32 %v422_v61, %v866_v4 }
 0x2ee   : > { %439 = vst [vmem:[%s188_s27 + $0x20] sm:$0xff] %v431_v62  ;;  %440 = vst [vmem:[%s188_s27 + $0x28] sm:$0xff] %v432_v63 }
 0x2ef   : > { %v426_v0 = vpop.permute.xlu1 %425 }
 0x2f0   : > { %v433_v1 = vmul.f32 %v426_v0, %v874_v8  ;;  %v434_v2 = vmul.f32 %v426_v0, %v876_v9 }
 0x2f2   : > { %441 = vst [vmem:[%s188_s27 + $0x30] sm:$0xff] %v433_v1  ;;  %442 = vst [vmem:[%s188_s27 + $0x38] sm:$0xff] %v434_v2 }
 0x2f3   : > { %670 = shalt.err (!%p667_p10)
}
 0x2f4   : > { %s671_s7 = scalar_lea.hbm %s911_s10, 1024  ;;  %s675_s19 = scalar_lea.hbm %s959_s3, 2048 }
 0x2f5   : > { %p672_p0 = scmp.ne.s32.totalorder %s911_s10, %s671_s7  ;;  %p676_p1 = scmp.lt.s32.totalorder %s911_s10, %s959_s3 }
 0x2f6   : > { %p677_p3 = scmp.lt.s32.totalorder %s675_s19, %s671_s7 }
 0x2f7   : > { %p673_p2 = pnand %p672_p0, %p968_p12 }
 0x2f8   : > { %p678_p6 = por %p677_p3, %p676_p1 }
 0x2f9   : > { %p674_p9 = pneg %p673_p2 }
 0x2fb   : > { %p679_p11 = pnand %p678_p6, %p674_p9 }
 0x2fd   : > { %682 = shalt.err (!%p679_p11)
}
 0x2fe   : > { %s729_s26 = smov 256   ;;  %s730_s27 = smov 16  }
 0x2ff   : > { %575 = dma.vmem_to_hbm [thread:$0]  (%p968_p12), %s906_s28, 1024, %s911_s10, %s444_s16, %s729_s26, %s729_s26, %s730_s27  }
 0x300 PF: > { %s472_s29 = sand.u32 1, %s709_s12   ;;  %p969_p13 = scmp.ne.s32.totalorder %s965_s25, 0 }
 0x301   : > { %p970_p4 = scmp.ge.s32.totalorder %s721_s15, 2  ;;  %s473_s30 = scalar_lea.sflag [#allocation4], %s472_s29 }
 0x303   : > { %p582_p5 = pnand %p970_p4, %p969_p13 }
 0x305   : > { %p583_p7 = pneg %p582_p5 }
 0x307   : > { %704 = dma.done.wait (%p583_p7), %s473_s30, 1024  }
 0x308   : > { %706 = vsyncadd (%p583_p7), %s473_s30, 4294966272  ;;  %p16_p8 = scmp.ge.s32.totalorder %s776_s18, 4   ;;  %s971_s12 = smov %s713_s13 }
 0x309   : > { %s972_s13 = smov %s717_s14  ;;  %s973_s14 = smov %s788_s21 }
 0x30a   : > { %s974_s15 = smov %s776_s18  ;;  %18 = sbr.rel (!%p16_p8) target bundleno = 5 (0x5), region = 77 }
 0x30f   :  { %478 = vsyncpa [#allocation3], 1 }
 0x310   :  { %480 = vsyncpa [#allocation3 + $0x1], 1 }
 0x311   :  { %481 = vsyncpa [#allocation4], 1 }
 0x312   :  { %483 = vsyncpa [#allocation4 + $0x1], 1 }

</bundles_post_ra>
